<compile_context>
chip_gen: v7x
topology: tpu7x:2x2x1
jax: 0.10.0
libtpu: 0.0.40
codegen_flags: <defaults>
</compile_context>

<pallas_src>
import jax
import jax.numpy as jnp
from jax.experimental import pallas as pl
from jax.experimental.pallas import tpu as pltpu

EPS = 1e-5  # PyTorch GroupNorm default eps


def _round_up(v, m):
    return -(-v // m) * m


def residual_block_unet_pallas(x_nchw, te, params, groups1, groups2, *,
                               compute_dtype=jnp.bfloat16, batch_tile=None):
    N, Cin, H, W = x_nchw.shape
    HW = H * W
    Cout = params["conv1_w"].shape[-1]
    T4 = te.shape[1]
    skip_is_conv = params["skip_w"] is not None
    cdt = compute_dtype

    # batch_tile: lane-pack images into matmul N, but keep >= 2 grid steps
    # when the batch allows (v7x megacore).  Single-TC v5e/v6e callers can pass
    # a larger batch_tile explicitly to amortize per-grid-step overhead.
    if batch_tile is None:
        batch_tile = min(max(1, N // 2), 8)
        while N % batch_tile:
            batch_tile -= 1
    elif N % batch_tile != 0:
        batch_tile = 1
    BHW = batch_tile * HW

    Cin_p = _round_up(Cin, 8)
    Cout_p = _round_up(Cout, 8)
    assert Cin % groups1 == 0 and Cout % groups2 == 0
    cg1 = Cin // groups1
    cg2 = Cout // groups2
    # Zero-padded channels are only safe when every group is a single channel
    # (padded channels then normalize to exactly 0 and carry zero conv weight).
    assert cg1 == 1 or Cin_p == Cin, \
        "Cin must be a multiple of 8 when a GroupNorm group spans >1 channel"
    assert cg2 == 1 or Cout_p == Cout, \
        "Cout must be a multiple of 8 when a GroupNorm group spans >1 channel"

    # ---- channel-major, lane-packed activations (wrapper-side layout only) --
    x = x_nchw.astype(cdt).reshape(N, Cin, HW)
    if Cin_p != Cin:
        x = jnp.pad(x, ((0, 0), (0, Cin_p - Cin), (0, 0)))
    if batch_tile > 1:
        x = (x.reshape(N // batch_tile, batch_tile, Cin_p, HW)
               .transpose(0, 2, 1, 3)
               .reshape(N // batch_tile, Cin_p, BHW))
    te_blk = (te.astype(jnp.float32)
                .reshape(N // batch_tile, batch_tile, T4)
                .transpose(0, 2, 1))                         # (N/bt, T4, bt)

    def col(v, c_pad, fill=0.0):
        v = v.reshape(-1).astype(jnp.float32)
        if v.shape[0] != c_pad:
            v = jnp.pad(v, (0, c_pad - v.shape[0]), constant_values=fill)
        return v.reshape(c_pad, 1)

    g1 = col(params["gn1_w"], Cin_p, 1.0)
    b1 = col(params["gn1_b"], Cin_p)
    g2 = col(params["gn2_w"], Cout_p, 1.0)
    b2 = col(params["gn2_b"], Cout_p)
    cb1 = col(params["conv1_b"], Cout_p)
    cb2 = col(params["conv2_b"], Cout_p)
    tb = col(params["time_b"], Cout_p)

    twT = jnp.zeros((Cout_p, T4), jnp.float32)
    twT = twT.at[:Cout, :].set(params["time_w"].astype(jnp.float32).T)

    def conv_mat(w_hwio, ci, ci_p, co, co_p):
        # HWIO (3,3,ci,co) -> (co_p, 9*ci_p); row k*ci_p + c is tap k, chan c.
        w = jnp.transpose(w_hwio.astype(jnp.float32), (3, 0, 1, 2))  # (co,3,3,ci)
        w = w.reshape(co, 9, ci)
        w = jnp.pad(w, ((0, co_p - co), (0, 0), (0, ci_p - ci)))
        return w.reshape(co_p, 9 * ci_p).astype(cdt)

    w1m = conv_mat(params["conv1_w"], Cin, Cin_p, Cout, Cout_p)
    w2m = conv_mat(params["conv2_w"], Cout, Cout_p, Cout, Cout_p)

    if skip_is_conv:
        swm = jnp.zeros((Cout_p, Cin_p), jnp.float32)
        swm = swm.at[:Cout, :Cin].set(params["skip_w"].astype(jnp.float32).T)
        swm = swm.astype(cdt)
        sb = col(params["skip_b"], Cout_p)

    # ---- 3x3 boundary masks, one (1, BHW) row per (dy, dx) tap.  Tiled over
    # the packed batch; they also zero every cross-image wrap of the rolls. ---
    yy = jnp.arange(H).reshape(H, 1)
    xx = jnp.arange(W).reshape(1, W)
    mrows = []
    for dy in range(3):
        for dx in range(3):
            ok = ((yy + dy - 1 >= 0) & (yy + dy - 1 < H) &
                  (xx + dx - 1 >= 0) & (xx + dx - 1 < W))
            mrows.append(ok.reshape(1, 1, HW))
    masks = jnp.concatenate(mrows, axis=0).astype(cdt)        # (9, 1, HW)
    masks = jnp.tile(masks, (1, 1, batch_tile))               # (9, 1, BHW)

    # ------------------------------ kernel ----------------------------------
    def gn_one_image(vb, gamma, beta, groups, cg, temb_col=None):
        # vb: (C_p, HW) one image.  Stats in f32; optional per-image temb is
        # added BEFORE the stats (matches norm2(silu(conv1)+temb)).
        vb = vb.astype(jnp.float32)
        if temb_col is not None:
            vb = vb + temb_col                                # (C_p, 1) bcast
        s = jnp.sum(vb, axis=1, keepdims=True)                # (C_p, 1)
        s2 = jnp.sum(vb * vb, axis=1, keepdims=True)
        if cg > 1:                                            # C_p == real C here
            sg = jnp.sum(s.reshape(groups, cg), axis=1, keepdims=True)
            sg2 = jnp.sum(s2.reshape(groups, cg), axis=1, keepdims=True)
            s = jnp.broadcast_to(sg, (groups, cg)).reshape(-1, 1)
            s2 = jnp.broadcast_to(sg2, (groups, cg)).reshape(-1, 1)
        inv_n = 1.0 / float(cg * HW)
        mean = s * inv_n
        # E[x^2]-mean^2 with a clamp at 0: fine for normalized diffusion
        # activations (use a shifted two-pass form if reused generically).
        var = jnp.maximum(s2 * inv_n - mean * mean, 0.0)
        inv = jax.lax.rsqrt(var + EPS)
        scale = inv * gamma
        shift = beta - mean * scale
        return vb * scale + shift                             # (C_p, HW) f32

    def group_norm(v, gamma, beta, groups, cg, temb=None):
        # v: (C_p, BHW).  Per-image stats via static, HW-aligned lane slices
        # (intermediates stay per-image sized; matmuls stay lane-packed).
        cols = []
        for b in range(batch_tile):
            vb = v[:, b * HW:(b + 1) * HW]
            tc = None if temb is None else temb[:, b:b + 1]
            cols.append(gn_one_image(vb, gamma, beta, groups, cg, tc))
        return cols[0] if batch_tile == 1 else jnp.concatenate(cols, axis=1)

    def conv3x3(v, wm_ref, cb_ref, mask_ref):
        # 9 taps via lane-roll + boundary mask.  Each tap is cast to cdt
        # BEFORE the concat so the slab is built (and stored) in cdt and hit
        # with a single im2col MXU matmul; no second full-slab copy.
        taps = []
        for dy in range(3):
            for dx in range(3):
                off = (dy - 1) * W + (dx - 1)
                if off == 0:
                    taps.append(v.astype(cdt))                # centre tap
                else:
                    t = pltpu.roll(v, shift=(-off) % BHW, axis=1)
                    taps.append(t.astype(cdt) * mask_ref[dy * 3 + dx])
        slab = jnp.concatenate(taps, axis=0)                  # (9*C, BHW) cdt
        out = jnp.dot(wm_ref[...], slab,
                      preferred_element_type=jnp.float32)     # (Cout_p, BHW) f32
        return out + cb_ref[...]

    def kernel(x_ref, te_ref, mask_ref, g1_ref, b1_ref, w1_ref, cb1_ref,
               tw_ref, tb_ref, g2_ref, b2_ref, w2_ref, cb2_ref, *rest):
        if skip_is_conv:
            sw_ref, sb_ref, out_ref = rest
        else:
            (out_ref,) = rest

        xb = x_ref[0]                                         # (Cin_p, BHW) cdt

        # GroupNorm1 -> conv1 -> SiLU   (lane-packed over batch_tile images)
        xn = group_norm(xb, g1_ref[...], b1_ref[...], groups1, cg1)
        h = conv3x3(xn, w1_ref, cb1_ref, mask_ref)
        h = h * jax.nn.sigmoid(h)

        # time embedding: one (Cout, T4) x (T4, bt) matmul per grid step.
        # (Cannot be folded into conv1's matmul: SiLU sits between conv1 and
        #  the time add in the module's forward.)
        temb = jnp.dot(tw_ref[...], te_ref[0],
                       preferred_element_type=jnp.float32) + tb_ref[...]

        # (+temb) -> GroupNorm2 -> conv2 -> SiLU
        hn = group_norm(h, g2_ref[...], b2_ref[...], groups2, cg2, temb=temb)
        h2 = conv3x3(hn, w2_ref, cb2_ref, mask_ref)
        h2 = h2 * jax.nn.sigmoid(h2)

        # skip connection (1x1 conv only when in_ch != out_ch)
        if skip_is_conv:
            sk = jnp.dot(sw_ref[...], xb,
                         preferred_element_type=jnp.float32) + sb_ref[...]
        else:
            sk = xb.astype(jnp.float32)
        out_ref[0] = h2 + sk

    const_arrays = [masks, g1, b1, w1m, cb1, twT, tb, g2, b2, w2m, cb2]
    if skip_is_conv:
        const_arrays += [swm, sb]

    # NOTE: constants could be single-buffered (pipeline_mode=pl.Buffered(1))
    # to halve their VMEM residency at production channel counts; left at the
    # default here for maximum lowering compatibility at these tiny sizes.
    def const_spec(a):
        return pl.BlockSpec(a.shape, lambda n, _nd=a.ndim: (0,) * _nd)

    in_specs = ([pl.BlockSpec((1, Cin_p, BHW), lambda n: (n, 0, 0)),
                 pl.BlockSpec((1, T4, batch_tile), lambda n: (n, 0, 0))]
                + [const_spec(a) for a in const_arrays])

    out_p = pl.pallas_call(
        kernel,
        out_shape=jax.ShapeDtypeStruct((N // batch_tile, Cout_p, BHW),
                                       jnp.float32),
        grid_spec=pltpu.PrefetchScalarGridSpec(
            num_scalar_prefetch=0,
            grid=(N // batch_tile,),
            in_specs=in_specs,
            out_specs=pl.BlockSpec((1, Cout_p, BHW), lambda n: (n, 0, 0)),
        ),
        # grid steps are independent image groups -> parallel (v7x: 2 TCs).
        compiler_params=pltpu.CompilerParams(
            dimension_semantics=("parallel",)),
    )(x, te_blk, *const_arrays)

    # NOTE: for production UNet sizes (H=W>=64, C>=256) add a spatial row-block
    # grid axis with a 1-row halo, replace the (9*C, HW) slab with 9
    # accumulating per-tap matmuls, and set vmem_limit_bytes per generation
    # (v7x has 64 MiB VMEM vs 128 MiB on v5e/v6e); unnecessary at these shapes.
    if batch_tile > 1:
        out_p = (out_p.reshape(N // batch_tile, Cout_p, batch_tile, HW)
                      .transpose(0, 2, 1, 3)
                      .reshape(N, Cout_p, HW))
    return out_p[:, :Cout, :].reshape(N, Cout, H, W)


def residual_block_unet_ref(x_nchw, te, params, groups1, groups2):
    """Pure-JAX reference (same math as the PyTorch module)."""
    x = jnp.transpose(x_nchw, (0, 2, 3, 1)).astype(jnp.float32)

    def gn(v, groups, gamma, beta):
        n, h, w, c = v.shape
        vg = v.reshape(n, h, w, groups, c // groups)
        mean = vg.mean(axis=(1, 2, 4), keepdims=True)
        var = ((vg - mean) ** 2).mean(axis=(1, 2, 4), keepdims=True)
        vn = ((vg - mean) / jnp.sqrt(var + EPS)).reshape(n, h, w, c)
        return vn * gamma + beta

    def conv3(v, w, b):
        return jax.lax.conv_general_dilated(
            v, w, (1, 1), "SAME",
            dimension_numbers=("NHWC", "HWIO", "NHWC")) + b

    silu = lambda z: z * jax.nn.sigmoid(z)
    h = silu(conv3(gn(x, groups1, params["gn1_w"], params["gn1_b"]),
                   params["conv1_w"], params["conv1_b"]))
    h = h + (te @ params["time_w"] + params["time_b"])[:, None, None, :]
    h = silu(conv3(gn(h, groups2, params["gn2_w"], params["gn2_b"]),
                   params["conv2_w"], params["conv2_b"]))
    if params["skip_w"] is not None:
        sk = jnp.einsum("nhwc,co->nhwo", x, params["skip_w"]) + params["skip_b"]
    else:
        sk = x
    return jnp.transpose(h + sk, (0, 3, 1, 2))


if __name__ == "__main__":
    key = jax.random.PRNGKey(0)
    N, in_ch, out_ch, H, W, time_dim = 2, 4, 8, 16, 16, 8
    groups1, groups2 = min(16, in_ch), min(16, out_ch)
    keys = jax.random.split(key, 14)

    x = jax.random.normal(keys[0], (N, in_ch, H, W), jnp.float32)
    te = jax.random.normal(keys[1], (N, time_dim * 4), jnp.float32)

    s = 0.1
    params = {
        "gn1_w": 1.0 + s * jax.random.normal(keys[2], (in_ch,), jnp.float32),
        "gn1_b": s * jax.random.normal(keys[3], (in_ch,), jnp.float32),
        "conv1_w": s * jax.random.normal(keys[4], (3, 3, in_ch, out_ch), jnp.float32),
        "conv1_b": s * jax.random.normal(keys[5], (out_ch,), jnp.float32),
        "gn2_w": 1.0 + s * jax.random.normal(keys[6], (out_ch,), jnp.float32),
        "gn2_b": s * jax.random.normal(keys[7], (out_ch,), jnp.float32),
        "conv2_w": s * jax.random.normal(keys[8], (3, 3, out_ch, out_ch), jnp.float32),
        "conv2_b": s * jax.random.normal(keys[9], (out_ch,), jnp.float32),
        "time_w": s * jax.random.normal(keys[10], (time_dim * 4, out_ch), jnp.float32),
        "time_b": s * jax.random.normal(keys[11], (out_ch,), jnp.float32),
        # in_ch != out_ch -> skip is a 1x1 conv
        "skip_w": s * jax.random.normal(keys[12], (in_ch, out_ch), jnp.float32),
        "skip_b": s * jax.random.normal(keys[13], (out_ch,), jnp.float32),
    }

    ref = residual_block_unet_ref(x, te, params, groups1, groups2)

    # Strict check: f32 everywhere, one image per grid step (grid of 2 steps,
    # i.e. the v7x-friendly configuration the default heuristic would pick).
    out_f32 = residual_block_unet_pallas(
        x, te, params, groups1, groups2,
        compute_dtype=jnp.float32, batch_tile=1)
    out_f32 = jax.block_until_ready(out_f32)
    assert out_f32.shape == (N, out_ch, H, W)
    err_f32 = float(jnp.max(jnp.abs(out_f32 - ref)))
    assert err_f32 < 1e-3, f"f32 max_err={err_f32}"

    # Fast path: bf16 slab/matmul operands (f32 accumulation + f32 GroupNorm
    # stats) with both images lane-packed into a single grid step to exercise
    # the packed path (on v7x prefer batch_tile that keeps >= 2 grid steps).
    out_bf16 = residual_block_unet_pallas(
        x, te, params, groups1, groups2,
        compute_dtype=jnp.bfloat16, batch_tile=2)
    out_bf16 = jax.block_until_ready(out_bf16)
    assert out_bf16.shape == (N, out_ch, H, W)
    err_bf16 = float(jnp.max(jnp.abs(out_bf16 - ref)))
    assert err_bf16 < 5e-2, f"bf16 max_err={err_bf16}"

    print("KERNEL_OK")
</pallas_src>

<mosaic_0001>
module attributes {stable_mosaic.version = 11 : i64} {
  func.func @kernel(%arg0: i32, %arg1: memref<1x8x256xf32, #tpu.memory_space<vmem>>, %arg2: memref<1x32x1xf32, #tpu.memory_space<vmem>>, %arg3: memref<9x1x256xf32, #tpu.memory_space<vmem>>, %arg4: memref<8x1xf32, #tpu.memory_space<vmem>>, %arg5: memref<8x1xf32, #tpu.memory_space<vmem>>, %arg6: memref<8x72xf32, #tpu.memory_space<vmem>>, %arg7: memref<8x1xf32, #tpu.memory_space<vmem>>, %arg8: memref<8x32xf32, #tpu.memory_space<vmem>>, %arg9: memref<8x1xf32, #tpu.memory_space<vmem>>, %arg10: memref<8x1xf32, #tpu.memory_space<vmem>>, %arg11: memref<8x1xf32, #tpu.memory_space<vmem>>, %arg12: memref<8x72xf32, #tpu.memory_space<vmem>>, %arg13: memref<8x1xf32, #tpu.memory_space<vmem>>, %arg14: memref<8x8xf32, #tpu.memory_space<vmem>>, %arg15: memref<8x1xf32, #tpu.memory_space<vmem>>, %arg16: memref<1x8x256xf32, #tpu.memory_space<vmem>>) attributes {dimension_semantics = [#tpu.dimension_semantics<parallel>], iteration_bounds = array<i64: 2>, scalar_prefetch = 0 : i64, scratch_operands = 0 : i64, tpu.core_type = #tpu.core_type<tc>, window_params = [{transform_indices = @transform_0, window_bounds = array<i64: 1, 8, 256>}, {transform_indices = @transform_1, window_bounds = array<i64: 1, 32, 1>}, {pipeline_mode = #tpu.pipeline_mode<synchronous>, transform_indices = @transform_2, window_bounds = array<i64: 9, 1, 256>}, {pipeline_mode = #tpu.pipeline_mode<synchronous>, transform_indices = @transform_3, window_bounds = array<i64: 8, 1>}, {pipeline_mode = #tpu.pipeline_mode<synchronous>, transform_indices = @transform_4, window_bounds = array<i64: 8, 1>}, {pipeline_mode = #tpu.pipeline_mode<synchronous>, transform_indices = @transform_5, window_bounds = array<i64: 8, 72>}, {pipeline_mode = #tpu.pipeline_mode<synchronous>, transform_indices = @transform_6, window_bounds = array<i64: 8, 1>}, {pipeline_mode = #tpu.pipeline_mode<synchronous>, transform_indices = @transform_7, window_bounds = array<i64: 8, 32>}, {pipeline_mode = #tpu.pipeline_mode<synchronous>, transform_indices = @transform_8, window_bounds = array<i64: 8, 1>}, {pipeline_mode = #tpu.pipeline_mode<synchronous>, transform_indices = @transform_9, window_bounds = array<i64: 8, 1>}, {pipeline_mode = #tpu.pipeline_mode<synchronous>, transform_indices = @transform_10, window_bounds = array<i64: 8, 1>}, {pipeline_mode = #tpu.pipeline_mode<synchronous>, transform_indices = @transform_11, window_bounds = array<i64: 8, 72>}, {pipeline_mode = #tpu.pipeline_mode<synchronous>, transform_indices = @transform_12, window_bounds = array<i64: 8, 1>}, {pipeline_mode = #tpu.pipeline_mode<synchronous>, transform_indices = @transform_13, window_bounds = array<i64: 8, 8>}, {pipeline_mode = #tpu.pipeline_mode<synchronous>, transform_indices = @transform_14, window_bounds = array<i64: 8, 1>}, {transform_indices = @transform_15, window_bounds = array<i64: 1, 8, 256>}]} {
    %c0 = arith.constant 0 : index
    %c0_0 = arith.constant 0 : index
    %c0_1 = arith.constant 0 : index
    %0 = vector.load %arg1[%c0, %c0_0, %c0_1] : memref<1x8x256xf32, #tpu.memory_space<vmem>>, vector<1x8x256xf32>
    %1 = vector.shape_cast %0 : vector<1x8x256xf32> to vector<8x256xf32>
    %c0_2 = arith.constant 0 : index
    %c0_3 = arith.constant 0 : index
    %2 = vector.load %arg4[%c0_2, %c0_3] : memref<8x1xf32, #tpu.memory_space<vmem>>, vector<8x1xf32>
    %c0_4 = arith.constant 0 : index
    %c0_5 = arith.constant 0 : index
    %3 = vector.load %arg5[%c0_4, %c0_5] : memref<8x1xf32, #tpu.memory_space<vmem>>, vector<8x1xf32>
    %cst = arith.constant dense<0.000000e+00> : vector<8xf32>
    %4 = vector.multi_reduction <add>, %1, %cst [1] : vector<8x256xf32> to vector<8xf32>
    %5 = vector.shape_cast %4 : vector<8xf32> to vector<8x1xf32>
    %6 = arith.mulf %1, %1 : vector<8x256xf32>
    %cst_6 = arith.constant dense<0.000000e+00> : vector<8xf32>
    %7 = vector.multi_reduction <add>, %6, %cst_6 [1] : vector<8x256xf32> to vector<8xf32>
    %8 = vector.shape_cast %7 : vector<8xf32> to vector<8x1xf32>
    %cst_7 = arith.constant 3.906250e-03 : f32
    %9 = vector.broadcast %cst_7 : f32 to vector<8x1xf32>
    %10 = arith.mulf %5, %9 : vector<8x1xf32>
    %cst_8 = arith.constant 3.906250e-03 : f32
    %11 = vector.broadcast %cst_8 : f32 to vector<8x1xf32>
    %12 = arith.mulf %8, %11 : vector<8x1xf32>
    %13 = arith.mulf %10, %10 : vector<8x1xf32>
    %14 = arith.subf %12, %13 : vector<8x1xf32>
    %cst_9 = arith.constant 0.000000e+00 : f32
    %15 = vector.broadcast %cst_9 : f32 to vector<8x1xf32>
    %16 = arith.maximumf %14, %15 : vector<8x1xf32>
    %cst_10 = arith.constant 9.99999974E-6 : f32
    %17 = vector.broadcast %cst_10 : f32 to vector<8x1xf32>
    %18 = arith.addf %16, %17 : vector<8x1xf32>
    %19 = math.rsqrt %18 : vector<8x1xf32>
    %20 = arith.mulf %19, %2 : vector<8x1xf32>
    %21 = arith.mulf %10, %20 : vector<8x1xf32>
    %22 = arith.subf %3, %21 : vector<8x1xf32>
    %23 = vector.broadcast %20 : vector<8x1xf32> to vector<8x256xf32>
    %24 = arith.mulf %1, %23 : vector<8x256xf32>
    %25 = vector.broadcast %22 : vector<8x1xf32> to vector<8x256xf32>
    %26 = arith.addf %24, %25 : vector<8x256xf32>
    %c17_i32 = arith.constant 17 : i32
    %27 = tpu.dynamic_rotate %26 by %c17_i32 dim 1 : vector<8x256xf32>, i32 -> vector<8x256xf32>
    %c0_11 = arith.constant 0 : index
    %c0_12 = arith.constant 0 : index
    %c0_13 = arith.constant 0 : index
    %28 = vector.load %arg3[%c0_11, %c0_12, %c0_13] : memref<9x1x256xf32, #tpu.memory_space<vmem>>, vector<1x1x256xf32>
    %29 = vector.shape_cast %28 : vector<1x1x256xf32> to vector<1x256xf32>
    %30 = vector.broadcast %29 : vector<1x256xf32> to vector<8x256xf32>
    %31 = arith.mulf %27, %30 : vector<8x256xf32>
    %c16_i32 = arith.constant 16 : i32
    %32 = tpu.dynamic_rotate %26 by %c16_i32 dim 1 : vector<8x256xf32>, i32 -> vector<8x256xf32>
    %c1 = arith.constant 1 : index
    %c0_14 = arith.constant 0 : index
    %c0_15 = arith.constant 0 : index
    %33 = vector.load %arg3[%c1, %c0_14, %c0_15] : memref<9x1x256xf32, #tpu.memory_space<vmem>>, vector<1x1x256xf32>
    %34 = vector.shape_cast %33 : vector<1x1x256xf32> to vector<1x256xf32>
    %35 = vector.broadcast %34 : vector<1x256xf32> to vector<8x256xf32>
    %36 = arith.mulf %32, %35 : vector<8x256xf32>
    %c15_i32 = arith.constant 15 : i32
    %37 = tpu.dynamic_rotate %26 by %c15_i32 dim 1 : vector<8x256xf32>, i32 -> vector<8x256xf32>
    %c2 = arith.constant 2 : index
    %c0_16 = arith.constant 0 : index
    %c0_17 = arith.constant 0 : index
    %38 = vector.load %arg3[%c2, %c0_16, %c0_17] : memref<9x1x256xf32, #tpu.memory_space<vmem>>, vector<1x1x256xf32>
    %39 = vector.shape_cast %38 : vector<1x1x256xf32> to vector<1x256xf32>
    %40 = vector.broadcast %39 : vector<1x256xf32> to vector<8x256xf32>
    %41 = arith.mulf %37, %40 : vector<8x256xf32>
    %c1_i32 = arith.constant 1 : i32
    %42 = tpu.dynamic_rotate %26 by %c1_i32 dim 1 : vector<8x256xf32>, i32 -> vector<8x256xf32>
    %c3 = arith.constant 3 : index
    %c0_18 = arith.constant 0 : index
    %c0_19 = arith.constant 0 : index
    %43 = vector.load %arg3[%c3, %c0_18, %c0_19] : memref<9x1x256xf32, #tpu.memory_space<vmem>>, vector<1x1x256xf32>
    %44 = vector.shape_cast %43 : vector<1x1x256xf32> to vector<1x256xf32>
    %45 = vector.broadcast %44 : vector<1x256xf32> to vector<8x256xf32>
    %46 = arith.mulf %42, %45 : vector<8x256xf32>
    %c255_i32 = arith.constant 255 : i32
    %47 = tpu.dynamic_rotate %26 by %c255_i32 dim 1 : vector<8x256xf32>, i32 -> vector<8x256xf32>
    %c5 = arith.constant 5 : index
    %c0_20 = arith.constant 0 : index
    %c0_21 = arith.constant 0 : index
    %48 = vector.load %arg3[%c5, %c0_20, %c0_21] : memref<9x1x256xf32, #tpu.memory_space<vmem>>, vector<1x1x256xf32>
    %49 = vector.shape_cast %48 : vector<1x1x256xf32> to vector<1x256xf32>
    %50 = vector.broadcast %49 : vector<1x256xf32> to vector<8x256xf32>
    %51 = arith.mulf %47, %50 : vector<8x256xf32>
    %c241_i32 = arith.constant 241 : i32
    %52 = tpu.dynamic_rotate %26 by %c241_i32 dim 1 : vector<8x256xf32>, i32 -> vector<8x256xf32>
    %c6 = arith.constant 6 : index
    %c0_22 = arith.constant 0 : index
    %c0_23 = arith.constant 0 : index
    %53 = vector.load %arg3[%c6, %c0_22, %c0_23] : memref<9x1x256xf32, #tpu.memory_space<vmem>>, vector<1x1x256xf32>
    %54 = vector.shape_cast %53 : vector<1x1x256xf32> to vector<1x256xf32>
    %55 = vector.broadcast %54 : vector<1x256xf32> to vector<8x256xf32>
    %56 = arith.mulf %52, %55 : vector<8x256xf32>
    %c240_i32 = arith.constant 240 : i32
    %57 = tpu.dynamic_rotate %26 by %c240_i32 dim 1 : vector<8x256xf32>, i32 -> vector<8x256xf32>
    %c7 = arith.constant 7 : index
    %c0_24 = arith.constant 0 : index
    %c0_25 = arith.constant 0 : index
    %58 = vector.load %arg3[%c7, %c0_24, %c0_25] : memref<9x1x256xf32, #tpu.memory_space<vmem>>, vector<1x1x256xf32>
    %59 = vector.shape_cast %58 : vector<1x1x256xf32> to vector<1x256xf32>
    %60 = vector.broadcast %59 : vector<1x256xf32> to vector<8x256xf32>
    %61 = arith.mulf %57, %60 : vector<8x256xf32>
    %c239_i32 = arith.constant 239 : i32
    %62 = tpu.dynamic_rotate %26 by %c239_i32 dim 1 : vector<8x256xf32>, i32 -> vector<8x256xf32>
    %c8 = arith.constant 8 : index
    %c0_26 = arith.constant 0 : index
    %c0_27 = arith.constant 0 : index
    %63 = vector.load %arg3[%c8, %c0_26, %c0_27] : memref<9x1x256xf32, #tpu.memory_space<vmem>>, vector<1x1x256xf32>
    %64 = vector.shape_cast %63 : vector<1x1x256xf32> to vector<1x256xf32>
    %65 = vector.broadcast %64 : vector<1x256xf32> to vector<8x256xf32>
    %66 = arith.mulf %62, %65 : vector<8x256xf32>
    %67 = tpu.concatenate %31, %36, %41, %46, %26, %51, %56, %61, %66 in 0 : vector<8x256xf32>, vector<8x256xf32>, vector<8x256xf32>, vector<8x256xf32>, vector<8x256xf32>, vector<8x256xf32>, vector<8x256xf32>, vector<8x256xf32>, vector<8x256xf32> -> vector<72x256xf32>
    %c0_28 = arith.constant 0 : index
    %c0_29 = arith.constant 0 : index
    %68 = vector.load %arg6[%c0_28, %c0_29] : memref<8x72xf32, #tpu.memory_space<vmem>>, vector<8x72xf32>
    %cst_30 = arith.constant dense<0.000000e+00> : vector<8x256xf32>
    %69 = tpu.matmul %68, %67, %cst_30 {dimension_numbers = #tpu.dot_dimension_numbers<[1], [0], [0], [1], [0, 0, 1, 1], [], []>} : vector<8x72xf32>, vector<72x256xf32>, vector<8x256xf32> -> vector<8x256xf32>
    %c0_31 = arith.constant 0 : index
    %c0_32 = arith.constant 0 : index
    %70 = vector.load %arg7[%c0_31, %c0_32] : memref<8x1xf32, #tpu.memory_space<vmem>>, vector<8x1xf32>
    %71 = vector.broadcast %70 : vector<8x1xf32> to vector<8x256xf32>
    %72 = arith.addf %69, %71 : vector<8x256xf32>
    %73 = arith.negf %72 : vector<8x256xf32>
    %74 = math.exp %73 : vector<8x256xf32>
    %cst_33 = arith.constant 1.000000e+00 : f32
    %75 = vector.broadcast %cst_33 : f32 to vector<8x256xf32>
    %76 = arith.addf %75, %74 : vector<8x256xf32>
    %77 = arith.divf %75, %76 : vector<8x256xf32>
    %78 = arith.mulf %72, %77 : vector<8x256xf32>
    %c0_34 = arith.constant 0 : index
    %c0_35 = arith.constant 0 : index
    %79 = vector.load %arg8[%c0_34, %c0_35] : memref<8x32xf32, #tpu.memory_space<vmem>>, vector<8x32xf32>
    %c0_36 = arith.constant 0 : index
    %c0_37 = arith.constant 0 : index
    %c0_38 = arith.constant 0 : index
    %80 = vector.load %arg2[%c0_36, %c0_37, %c0_38] : memref<1x32x1xf32, #tpu.memory_space<vmem>>, vector<1x32x1xf32>
    %81 = vector.shape_cast %80 : vector<1x32x1xf32> to vector<32x1xf32>
    %cst_39 = arith.constant dense<0.000000e+00> : vector<8x1xf32>
    %82 = tpu.matmul %79, %81, %cst_39 {dimension_numbers = #tpu.dot_dimension_numbers<[1], [0], [0], [1], [0, 0, 1, 1], [], []>} : vector<8x32xf32>, vector<32x1xf32>, vector<8x1xf32> -> vector<8x1xf32>
    %c0_40 = arith.constant 0 : index
    %c0_41 = arith.constant 0 : index
    %83 = vector.load %arg9[%c0_40, %c0_41] : memref<8x1xf32, #tpu.memory_space<vmem>>, vector<8x1xf32>
    %84 = arith.addf %82, %83 : vector<8x1xf32>
    %c0_42 = arith.constant 0 : index
    %c0_43 = arith.constant 0 : index
    %85 = vector.load %arg10[%c0_42, %c0_43] : memref<8x1xf32, #tpu.memory_space<vmem>>, vector<8x1xf32>
    %c0_44 = arith.constant 0 : index
    %c0_45 = arith.constant 0 : index
    %86 = vector.load %arg11[%c0_44, %c0_45] : memref<8x1xf32, #tpu.memory_space<vmem>>, vector<8x1xf32>
    %87 = vector.broadcast %84 : vector<8x1xf32> to vector<8x256xf32>
    %88 = arith.addf %78, %87 : vector<8x256xf32>
    %cst_46 = arith.constant dense<0.000000e+00> : vector<8xf32>
    %89 = vector.multi_reduction <add>, %88, %cst_46 [1] : vector<8x256xf32> to vector<8xf32>
    %90 = vector.shape_cast %89 : vector<8xf32> to vector<8x1xf32>
    %91 = arith.mulf %88, %88 : vector<8x256xf32>
    %cst_47 = arith.constant dense<0.000000e+00> : vector<8xf32>
    %92 = vector.multi_reduction <add>, %91, %cst_47 [1] : vector<8x256xf32> to vector<8xf32>
    %93 = vector.shape_cast %92 : vector<8xf32> to vector<8x1xf32>
    %cst_48 = arith.constant 3.906250e-03 : f32
    %94 = vector.broadcast %cst_48 : f32 to vector<8x1xf32>
    %95 = arith.mulf %90, %94 : vector<8x1xf32>
    %cst_49 = arith.constant 3.906250e-03 : f32
    %96 = vector.broadcast %cst_49 : f32 to vector<8x1xf32>
    %97 = arith.mulf %93, %96 : vector<8x1xf32>
    %98 = arith.mulf %95, %95 : vector<8x1xf32>
    %99 = arith.subf %97, %98 : vector<8x1xf32>
    %cst_50 = arith.constant 0.000000e+00 : f32
    %100 = vector.broadcast %cst_50 : f32 to vector<8x1xf32>
    %101 = arith.maximumf %99, %100 : vector<8x1xf32>
    %cst_51 = arith.constant 9.99999974E-6 : f32
    %102 = vector.broadcast %cst_51 : f32 to vector<8x1xf32>
    %103 = arith.addf %101, %102 : vector<8x1xf32>
    %104 = math.rsqrt %103 : vector<8x1xf32>
    %105 = arith.mulf %104, %85 : vector<8x1xf32>
    %106 = arith.mulf %95, %105 : vector<8x1xf32>
    %107 = arith.subf %86, %106 : vector<8x1xf32>
    %108 = vector.broadcast %105 : vector<8x1xf32> to vector<8x256xf32>
    %109 = arith.mulf %88, %108 : vector<8x256xf32>
    %110 = vector.broadcast %107 : vector<8x1xf32> to vector<8x256xf32>
    %111 = arith.addf %109, %110 : vector<8x256xf32>
    %c17_i32_52 = arith.constant 17 : i32
    %112 = tpu.dynamic_rotate %111 by %c17_i32_52 dim 1 : vector<8x256xf32>, i32 -> vector<8x256xf32>
    %c0_53 = arith.constant 0 : index
    %c0_54 = arith.constant 0 : index
    %c0_55 = arith.constant 0 : index
    %113 = vector.load %arg3[%c0_53, %c0_54, %c0_55] : memref<9x1x256xf32, #tpu.memory_space<vmem>>, vector<1x1x256xf32>
    %114 = vector.shape_cast %113 : vector<1x1x256xf32> to vector<1x256xf32>
    %115 = vector.broadcast %114 : vector<1x256xf32> to vector<8x256xf32>
    %116 = arith.mulf %112, %115 : vector<8x256xf32>
    %c16_i32_56 = arith.constant 16 : i32
    %117 = tpu.dynamic_rotate %111 by %c16_i32_56 dim 1 : vector<8x256xf32>, i32 -> vector<8x256xf32>
    %c1_57 = arith.constant 1 : index
    %c0_58 = arith.constant 0 : index
    %c0_59 = arith.constant 0 : index
    %118 = vector.load %arg3[%c1_57, %c0_58, %c0_59] : memref<9x1x256xf32, #tpu.memory_space<vmem>>, vector<1x1x256xf32>
    %119 = vector.shape_cast %118 : vector<1x1x256xf32> to vector<1x256xf32>
    %120 = vector.broadcast %119 : vector<1x256xf32> to vector<8x256xf32>
    %121 = arith.mulf %117, %120 : vector<8x256xf32>
    %c15_i32_60 = arith.constant 15 : i32
    %122 = tpu.dynamic_rotate %111 by %c15_i32_60 dim 1 : vector<8x256xf32>, i32 -> vector<8x256xf32>
    %c2_61 = arith.constant 2 : index
    %c0_62 = arith.constant 0 : index
    %c0_63 = arith.constant 0 : index
    %123 = vector.load %arg3[%c2_61, %c0_62, %c0_63] : memref<9x1x256xf32, #tpu.memory_space<vmem>>, vector<1x1x256xf32>
    %124 = vector.shape_cast %123 : vector<1x1x256xf32> to vector<1x256xf32>
    %125 = vector.broadcast %124 : vector<1x256xf32> to vector<8x256xf32>
    %126 = arith.mulf %122, %125 : vector<8x256xf32>
    %c1_i32_64 = arith.constant 1 : i32
    %127 = tpu.dynamic_rotate %111 by %c1_i32_64 dim 1 : vector<8x256xf32>, i32 -> vector<8x256xf32>
    %c3_65 = arith.constant 3 : index
    %c0_66 = arith.constant 0 : index
    %c0_67 = arith.constant 0 : index
    %128 = vector.load %arg3[%c3_65, %c0_66, %c0_67] : memref<9x1x256xf32, #tpu.memory_space<vmem>>, vector<1x1x256xf32>
    %129 = vector.shape_cast %128 : vector<1x1x256xf32> to vector<1x256xf32>
    %130 = vector.broadcast %129 : vector<1x256xf32> to vector<8x256xf32>
    %131 = arith.mulf %127, %130 : vector<8x256xf32>
    %c255_i32_68 = arith.constant 255 : i32
    %132 = tpu.dynamic_rotate %111 by %c255_i32_68 dim 1 : vector<8x256xf32>, i32 -> vector<8x256xf32>
    %c5_69 = arith.constant 5 : index
    %c0_70 = arith.constant 0 : index
    %c0_71 = arith.constant 0 : index
    %133 = vector.load %arg3[%c5_69, %c0_70, %c0_71] : memref<9x1x256xf32, #tpu.memory_space<vmem>>, vector<1x1x256xf32>
    %134 = vector.shape_cast %133 : vector<1x1x256xf32> to vector<1x256xf32>
    %135 = vector.broadcast %134 : vector<1x256xf32> to vector<8x256xf32>
    %136 = arith.mulf %132, %135 : vector<8x256xf32>
    %c241_i32_72 = arith.constant 241 : i32
    %137 = tpu.dynamic_rotate %111 by %c241_i32_72 dim 1 : vector<8x256xf32>, i32 -> vector<8x256xf32>
    %c6_73 = arith.constant 6 : index
    %c0_74 = arith.constant 0 : index
    %c0_75 = arith.constant 0 : index
    %138 = vector.load %arg3[%c6_73, %c0_74, %c0_75] : memref<9x1x256xf32, #tpu.memory_space<vmem>>, vector<1x1x256xf32>
    %139 = vector.shape_cast %138 : vector<1x1x256xf32> to vector<1x256xf32>
    %140 = vector.broadcast %139 : vector<1x256xf32> to vector<8x256xf32>
    %141 = arith.mulf %137, %140 : vector<8x256xf32>
    %c240_i32_76 = arith.constant 240 : i32
    %142 = tpu.dynamic_rotate %111 by %c240_i32_76 dim 1 : vector<8x256xf32>, i32 -> vector<8x256xf32>
    %c7_77 = arith.constant 7 : index
    %c0_78 = arith.constant 0 : index
    %c0_79 = arith.constant 0 : index
    %143 = vector.load %arg3[%c7_77, %c0_78, %c0_79] : memref<9x1x256xf32, #tpu.memory_space<vmem>>, vector<1x1x256xf32>
    %144 = vector.shape_cast %143 : vector<1x1x256xf32> to vector<1x256xf32>
    %145 = vector.broadcast %144 : vector<1x256xf32> to vector<8x256xf32>
    %146 = arith.mulf %142, %145 : vector<8x256xf32>
    %c239_i32_80 = arith.constant 239 : i32
    %147 = tpu.dynamic_rotate %111 by %c239_i32_80 dim 1 : vector<8x256xf32>, i32 -> vector<8x256xf32>
    %c8_81 = arith.constant 8 : index
    %c0_82 = arith.constant 0 : index
    %c0_83 = arith.constant 0 : index
    %148 = vector.load %arg3[%c8_81, %c0_82, %c0_83] : memref<9x1x256xf32, #tpu.memory_space<vmem>>, vector<1x1x256xf32>
    %149 = vector.shape_cast %148 : vector<1x1x256xf32> to vector<1x256xf32>
    %150 = vector.broadcast %149 : vector<1x256xf32> to vector<8x256xf32>
    %151 = arith.mulf %147, %150 : vector<8x256xf32>
    %152 = tpu.concatenate %116, %121, %126, %131, %111, %136, %141, %146, %151 in 0 : vector<8x256xf32>, vector<8x256xf32>, vector<8x256xf32>, vector<8x256xf32>, vector<8x256xf32>, vector<8x256xf32>, vector<8x256xf32>, vector<8x256xf32>, vector<8x256xf32> -> vector<72x256xf32>
    %c0_84 = arith.constant 0 : index
    %c0_85 = arith.constant 0 : index
    %153 = vector.load %arg12[%c0_84, %c0_85] : memref<8x72xf32, #tpu.memory_space<vmem>>, vector<8x72xf32>
    %cst_86 = arith.constant dense<0.000000e+00> : vector<8x256xf32>
    %154 = tpu.matmul %153, %152, %cst_86 {dimension_numbers = #tpu.dot_dimension_numbers<[1], [0], [0], [1], [0, 0, 1, 1], [], []>} : vector<8x72xf32>, vector<72x256xf32>, vector<8x256xf32> -> vector<8x256xf32>
    %c0_87 = arith.constant 0 : index
    %c0_88 = arith.constant 0 : index
    %155 = vector.load %arg13[%c0_87, %c0_88] : memref<8x1xf32, #tpu.memory_space<vmem>>, vector<8x1xf32>
    %156 = vector.broadcast %155 : vector<8x1xf32> to vector<8x256xf32>
    %157 = arith.addf %154, %156 : vector<8x256xf32>
    %158 = arith.negf %157 : vector<8x256xf32>
    %159 = math.exp %158 : vector<8x256xf32>
    %cst_89 = arith.constant 1.000000e+00 : f32
    %160 = vector.broadcast %cst_89 : f32 to vector<8x256xf32>
    %161 = arith.addf %160, %159 : vector<8x256xf32>
    %162 = arith.divf %160, %161 : vector<8x256xf32>
    %163 = arith.mulf %157, %162 : vector<8x256xf32>
    %c0_90 = arith.constant 0 : index
    %c0_91 = arith.constant 0 : index
    %164 = vector.load %arg14[%c0_90, %c0_91] : memref<8x8xf32, #tpu.memory_space<vmem>>, vector<8x8xf32>
    %cst_92 = arith.constant dense<0.000000e+00> : vector<8x256xf32>
    %165 = tpu.matmul %164, %1, %cst_92 {dimension_numbers = #tpu.dot_dimension_numbers<[1], [0], [0], [1], [0, 0, 1, 1], [], []>} : vector<8x8xf32>, vector<8x256xf32>, vector<8x256xf32> -> vector<8x256xf32>
    %c0_93 = arith.constant 0 : index
    %c0_94 = arith.constant 0 : index
    %166 = vector.load %arg15[%c0_93, %c0_94] : memref<8x1xf32, #tpu.memory_space<vmem>>, vector<8x1xf32>
    %167 = vector.broadcast %166 : vector<8x1xf32> to vector<8x256xf32>
    %168 = arith.addf %165, %167 : vector<8x256xf32>
    %169 = arith.addf %163, %168 : vector<8x256xf32>
    %c0_95 = arith.constant 0 : index
    %c0_96 = arith.constant 0 : index
    %c0_97 = arith.constant 0 : index
    %170 = vector.load %arg16[%c0_95, %c0_96, %c0_97] : memref<1x8x256xf32, #tpu.memory_space<vmem>>, vector<1x8x256xf32>
    %171 = vector.shape_cast %170 : vector<1x8x256xf32> to vector<8x256xf32>
    %172 = vector.shape_cast %169 : vector<8x256xf32> to vector<1x8x256xf32>
    tpu.vector_store %arg16[%c0_95, %c0_96, %c0_97], %172 {strides = array<i32>} : memref<1x8x256xf32, #tpu.memory_space<vmem>>, vector<1x8x256xf32>,
    return
  }
  func.func @transform_0(%arg0: i32) -> (i32, i32, i32) {
    %c0_i32 = arith.constant 0 : i32
    %c0_i32_0 = arith.constant 0 : i32
    %c0_i32_1 = arith.constant 0 : i32
    return %arg0, %c0_i32, %c0_i32_0 : i32, i32, i32
  }
  func.func @transform_1(%arg0: i32) -> (i32, i32, i32) {
    %c0_i32 = arith.constant 0 : i32
    %c0_i32_0 = arith.constant 0 : i32
    %c0_i32_1 = arith.constant 0 : i32
    return %arg0, %c0_i32, %c0_i32_0 : i32, i32, i32
  }
  func.func @transform_2(%arg0: i32) -> (i32, i32, i32) {
    %c0_i32 = arith.constant 0 : i32
    %c0_i32_0 = arith.constant 0 : i32
    %c0_i32_1 = arith.constant 0 : i32
    %c0_i32_2 = arith.constant 0 : i32
    return %c0_i32, %c0_i32_0, %c0_i32_1 : i32, i32, i32
  }
  func.func @transform_3(%arg0: i32) -> (i32, i32) {
    %c0_i32 = arith.constant 0 : i32
    %c0_i32_0 = arith.constant 0 : i32
    %c0_i32_1 = arith.constant 0 : i32
    return %c0_i32, %c0_i32_0 : i32, i32
  }
  func.func @transform_4(%arg0: i32) -> (i32, i32) {
    %c0_i32 = arith.constant 0 : i32
    %c0_i32_0 = arith.constant 0 : i32
    %c0_i32_1 = arith.constant 0 : i32
    return %c0_i32, %c0_i32_0 : i32, i32
  }
  func.func @transform_5(%arg0: i32) -> (i32, i32) {
    %c0_i32 = arith.constant 0 : i32
    %c0_i32_0 = arith.constant 0 : i32
    %c0_i32_1 = arith.constant 0 : i32
    return %c0_i32, %c0_i32_0 : i32, i32
  }
  func.func @transform_6(%arg0: i32) -> (i32, i32) {
    %c0_i32 = arith.constant 0 : i32
    %c0_i32_0 = arith.constant 0 : i32
    %c0_i32_1 = arith.constant 0 : i32
    return %c0_i32, %c0_i32_0 : i32, i32
  }
  func.func @transform_7(%arg0: i32) -> (i32, i32) {
    %c0_i32 = arith.constant 0 : i32
    %c0_i32_0 = arith.constant 0 : i32
    %c0_i32_1 = arith.constant 0 : i32
    return %c0_i32, %c0_i32_0 : i32, i32
  }
  func.func @transform_8(%arg0: i32) -> (i32, i32) {
    %c0_i32 = arith.constant 0 : i32
    %c0_i32_0 = arith.constant 0 : i32
    %c0_i32_1 = arith.constant 0 : i32
    return %c0_i32, %c0_i32_0 : i32, i32
  }
  func.func @transform_9(%arg0: i32) -> (i32, i32) {
    %c0_i32 = arith.constant 0 : i32
    %c0_i32_0 = arith.constant 0 : i32
    %c0_i32_1 = arith.constant 0 : i32
    return %c0_i32, %c0_i32_0 : i32, i32
  }
  func.func @transform_10(%arg0: i32) -> (i32, i32) {
    %c0_i32 = arith.constant 0 : i32
    %c0_i32_0 = arith.constant 0 : i32
    %c0_i32_1 = arith.constant 0 : i32
    return %c0_i32, %c0_i32_0 : i32, i32
  }
  func.func @transform_11(%arg0: i32) -> (i32, i32) {
    %c0_i32 = arith.constant 0 : i32
    %c0_i32_0 = arith.constant 0 : i32
    %c0_i32_1 = arith.constant 0 : i32
    return %c0_i32, %c0_i32_0 : i32, i32
  }
  func.func @transform_12(%arg0: i32) -> (i32, i32) {
    %c0_i32 = arith.constant 0 : i32
    %c0_i32_0 = arith.constant 0 : i32
    %c0_i32_1 = arith.constant 0 : i32
    return %c0_i32, %c0_i32_0 : i32, i32
  }
  func.func @transform_13(%arg0: i32) -> (i32, i32) {
    %c0_i32 = arith.constant 0 : i32
    %c0_i32_0 = arith.constant 0 : i32
    %c0_i32_1 = arith.constant 0 : i32
    return %c0_i32, %c0_i32_0 : i32, i32
  }
  func.func @transform_14(%arg0: i32) -> (i32, i32) {
    %c0_i32 = arith.constant 0 : i32
    %c0_i32_0 = arith.constant 0 : i32
    %c0_i32_1 = arith.constant 0 : i32
    return %c0_i32, %c0_i32_0 : i32, i32
  }
  func.func @transform_15(%arg0: i32) -> (i32, i32, i32) {
    %c0_i32 = arith.constant 0 : i32
    %c0_i32_0 = arith.constant 0 : i32
    %c0_i32_1 = arith.constant 0 : i32
    return %arg0, %c0_i32, %c0_i32_0 : i32, i32, i32
  }
}

</mosaic_0001>

<bundles_post_ra>
// kernel: tpu_custom_call.1
= control target key start
LH: loop header
LB: loop body
LE: loop exit
PB: predicated region body
PF: predicated region fallthrough
CT: control target
= control target key end

     0   :  { %s2017_s0 = inlined_call_operand.vmem [shape: f32[2,8,256], index: 0, kind: input, shape index: {}]   ;;  %s2018_s1 = inlined_call_operand.vmem [shape: f32[2,32,1], index: 1, kind: input, shape index: {}]   ;;  %s2019_s2 = inlined_call_operand.vmem [shape: f32[9,1,256], index: 2, kind: input, shape index: {}]   ;;  %s2020_s3 = inlined_call_operand.vmem [shape: f32[8,1], index: 3, kind: input, shape index: {}]   ;;  %s2021_s4 = inlined_call_operand.vmem [shape: f32[8,1], index: 4, kind: input, shape index: {}]   ;;  %s2022_s5 = inlined_call_operand.vmem [shape: f32[8,72], index: 5, kind: input, shape index: {}]   ;;  %s2023_s6 = inlined_call_operand.vmem [shape: f32[8,1], index: 6, kind: input, shape index: {}]   ;;  %s2024_s7 = inlined_call_operand.vmem [shape: f32[8,32], index: 7, kind: input, shape index: {}]   ;;  %s2025_s8 = inlined_call_operand.vmem [shape: f32[8,1], index: 8, kind: input, shape index: {}]   ;;  %s2026_s9 = inlined_call_operand.vmem [shape: f32[8,1], index: 9, kind: input, shape index: {}]   ;;  %s2027_s10 = inlined_call_operand.vmem [shape: f32[8,1], index: 10, kind: input, shape index: {}]   ;;  %s2028_s11 = inlined_call_operand.vmem [shape: f32[8,72], index: 11, kind: input, shape index: {}]   ;;  %s2029_s12 = inlined_call_operand.vmem [shape: f32[8,1], index: 12, kind: input, shape index: {}]   ;;  %s2030_s13 = inlined_call_operand.vmem [shape: f32[8,8], index: 13, kind: input, shape index: {}]   ;;  %s2031_s14 = inlined_call_operand.vmem [shape: f32[8,1], index: 14, kind: input, shape index: {}]   ;;  %s2032_s15 = inlined_call_operand.hbm [shape: f32[2,8,256], index: 15, kind: output, shape index: {}]  }
   0x1   :  { %2044 = sst [smem:[#allocation7_spill]] %s2017_s0 }
   0x2   :  { %2045 = sst [smem:[#allocation8_spill]] %s2018_s1 }
   0x3   :  { %2046 = sst [smem:[#allocation9_spill]] %s2019_s2 }
   0x4   :  { %20 = vsyncpa [#allocation3], 0 }
   0x5   :  { %22 = vsyncpa [#allocation3 + $0x1], 0  ;;  %s1590_s18 = smov 0   ;;  %s1592_s19 = smov 0  }
   0x6   :  { %s1594_s20 = smov 0   ;;  %s1596_s21 = smov 0  }
   0x7 LB: > { %2047 = sst [smem:[#allocation5_spill]] %s1491_s20  ;;  %s1611_s22 = sadd.s32 4294967295, %s1495_s21   ;;  %s1495_s21 = sphi %s1596_s21, %s2063_s21   ;;  %s1491_s20 = sphi %s1594_s20, %s2060_s20   ;;  %s1487_s19 = sphi %s1592_s19, %s2062_s19   ;;  %s1483_s18 = sphi %s1590_s18, %s2061_s18  }
   0x8   : > { %s1274_s23 = sadd.s32 4294967294, %s1495_s21   ;;  %s1615_s24 = sadd.s32 1, %s1495_s21  }
   0x9   : > { %s360_s25 = sadd.s32 1, %s1491_s20  ;;  %s357_s26 = ssub.s32 %s1495_s21, %s1615_s24 }
   0xa   : > { %p370_p0 = scmp.ne.s32.totalorder %s1491_s20, %s1487_s19  ;;  %p358_p1 = scmp.eq.s32.totalorder %s357_s26, 0 }
   0xb   : > { %p371_p2 = scmp.eq.s32.totalorder %s1611_s22, 1  ;;  %p376_p3 = scmp.ne.s32.totalorder %s1487_s19, %s1483_s18 }
   0xc   : > { %p377_p4 = scmp.eq.s32.totalorder %s1274_s23, 1  ;;  %p1277_p7 = scmp.ge.s32.totalorder %s1495_s21, 1 }
   0xd   : > { %s1626_s27 = scalar_select %p358_p1, %s1491_s20, %s360_s25  }
   0xe   : > { %p1628_p5 = por %p371_p2, %p370_p0  ;;  %p1632_p6 = por %p377_p4, %p376_p3 }
   0xf   : > { %2048 = sst [smem:[#allocation6_spill]] %s1626_s27  ;;  %p450_p8 = scmp.lt.s32.totalorder %s1495_s21, 3 }
  0x11   : > { %p451_p9 = pnand %p1277_p7, %p450_p8 }
  0x12   : > { %p503_p10 = scmp.lt.s32.totalorder (!%p451_p9), %s1611_s22, 1  ;;  %s2051_s0 = sld [smem:[#allocation7_spill]] (!%p451_p9)  ;;  %v1497_v6 = vmov (!%p451_p9), 0   ;;  %v515_v15 = vld [vmem:[%s2020_s3] sm:$0xff] (!%p451_p9)  ;;  %v1498_v21 = vmov (!%p451_p9), 0.0|0.0   ;;  %vm1499_vm0 = vmmov (!%p451_p9), 0   ;;  %v553_v37 = vlaneseq (!%p451_p9) }
  0x13   : > { %454 = sbr.rel (%p451_p9) target bundleno = 1451 (0x5ab), region = 80  ;;  %1411 = vset.pattern.permute.xlu1 (!%p451_p9), %v1497_v6  ;;  %1412 = vset.pattern.permute.xlu0 (!%p451_p9), %v1497_v6  ;;  %v516_v18 = vld [vmem:[%s2021_s4] sm:$0xff] (!%p451_p9)  ;;  %s2052_s1 = sld [smem:[#allocation8_spill]] (!%p451_p9)  ;;  %v1500_v22 = vmov (!%p451_p9), 0.0   ;;  %vm828_vm1 = vcmask (!%p451_p9), 261120   ;;  %vm733_vm10 = vcmask (!%p451_p9), 588800  }
  0x14   : > { %1338 = vmatprep.subr.bf16.mxu1 (!%p451_p9), %v1498_v21  ;;  %1319 = vmatprep.mubr.msk.f32.mxu1 (!%p451_p9), %vm1499_vm0, %v1500_v22  ;;  %v822_v29 = vld [vmem:[%s2024_s7] sm:$0xff] (!%p451_p9)  ;;  %s1503_s27 = smov (!%p451_p9), 1   ;;  %s2034_s17 = smov (!%p451_p9), 15   ;;  %v561_v38 = vshrl.u32 (!%p451_p9), %v553_v37, 7  ;;  %v1713_v40 = vand.u32 (!%p451_p9), 127, %v553_v37  ;;  %vm1109_vm11 = vcmask (!%p451_p9), 64512  }
  0x15   : > { %801 = vmatprep.mubr.f32.mxu0 (!%p451_p9), %v1500_v22  ;;  %s2038_s23 = smov (!%p451_p9), 113   ;;  %v727_v36 = vld [vmem:[%s2023_s6] sm:$0xff] (!%p451_p9)  ;;  %s2053_s2 = sld [smem:[#allocation9_spill]] (!%p451_p9) }
  0x16   : > { %v1715_v41 = vsub.s32 (!%p451_p9), 0, %v561_v38  ;;  %v1720_v43 = vsub.s32 (!%p451_p9), 1, %v561_v38  ;;  %vm555_vm2 = vcmp.lt.s32.totalorder (!%p451_p9), %v1713_v40, 17  ;;  %vm576_vm3 = vcmp.lt.s32.totalorder (!%p451_p9), %v1713_v40, 16  ;;  %s2055_s26 = smov (!%p451_p9), 127  }
  0x17   : > { %vm598_vm4 = vcmp.lt.s32.totalorder (!%p451_p9), %v1713_v40, 15  ;;  %vm620_vm5 = vcmp.lt.s32.totalorder (!%p451_p9), %v1713_v40, 1  ;;  %vm642_vm6 = vcmp.lt.s32.totalorder (!%p451_p9), %v1713_v40, 127  ;;  %vm664_vm7 = vcmp.lt.s32.totalorder (!%p451_p9), %v1713_v40, 113 }
  0x18   : > { %vm686_vm8 = vcmp.lt.s32.totalorder (!%p451_p9), %v1713_v40, 112  ;;  %vm708_vm9 = vcmp.lt.s32.totalorder (!%p451_p9), %v1713_v40, 111 }
  0x1a   : > { %s1640_s30 = scalar_select %p503_p10, %s1611_s22, 1 }
  0x1b   : > { %v558_v42 = vld [vmem:[%s2053_s2] sm:$0x3]  ;;  %v1283_v44 = vld [vmem:[%s2053_s2 + $0x2] sm:$0x3]  ;;  %v1287_v37 = vld [vmem:[%s2053_s2 + $0xc] sm:$0x3] }
  0x1c   : > { %s1303_s16 = sshll.u32 %s1640_s30, 4  ;;  %v1727_v47 = vrot.slane %v558_v42, %v1715_v41  ;;  %v1731_v48 = vrot.slane %v1283_v44, %v1715_v41  ;;  %v1734_v49 = vrot.slane %v558_v42, %v1720_v43  ;;  %v1737_v50 = vrot.slane %v1283_v44, %v1720_v43  ;;  %v1288_v38 = vld [vmem:[%s2053_s2 + $0xe] sm:$0x3] }
  0x1d   : > { %s507_s25 = scalar_lea.vmem %s2051_s0, %s1303_s16  ;;  %s1501_s0 = smov 17  }
  0x1e   : > { %v1646_v0 = vld [vmem:[%s507_s25] sm:$0xff]  ;;  %v1648_v1 = vld [vmem:[%s507_s25 + $0x8] sm:$0xff]  ;;  %s1304_s25 = sshll.u32 %s1640_s30, 5  ;;  %s2036_s16 = smov 127  }
  0x1f   : > { %v517_v2 = vadd.f32 %v1648_v1, %v1646_v0  ;;  %v520_v3 = vmul.f32 %v1646_v0, %v1646_v0  ;;  %v521_v4 = vmul.f32 %v1648_v1, %v1648_v1  ;;  %s512_s20 = scalar_lea.vmem %s2052_s1, %s1304_s25  ;;  %s2040_s25 = smov 112  }
  0x20   : > { %v823_v23 = vld [vmem:[%s512_s20] sm:$0xff]  ;;  %v824_v24 = vld [vmem:[%s512_s20 + $0x8] sm:$0xff]  ;;  %v825_v25 = vld [vmem:[%s512_s20 + $0x10] sm:$0xff]  ;;  %s2042_s30 = smov 111  }
  0x21   : > { %518 = vadd.xlane.f32.xlu0 %v517_v2  ;;  %v522_v5 = vadd.f32 %v521_v4, %v520_v3  ;;  %v1339_v26 = vpack.c.bf16 %v824_v24, %v823_v23  ;;  %v826_v27 = vld [vmem:[%s512_s20 + $0x18] sm:$0xff]  ;;  %s1502_s20 = smov 16   ;;  %v1284_v2 = vld [vmem:[%s2053_s2 + $0x4] sm:$0x3]  ;;  %v1285_v3 = vld [vmem:[%s2053_s2 + $0x6] sm:$0x3] }
  0x22   : > { %v1342_v28 = vpack.c.bf16 %v826_v27, %v825_v25  ;;  %v1762_v6 = vrot.slane %v1284_v2, %v1720_v43 }
  0x23   : > { %1340 = vmatpush3.bf16.msra.mxu1 %v1339_v26 }
  0x24   : > { %1341 = vmatprep.subr.bf16.mxu1 %v1498_v21 }
  0x25   : > { %523 = vadd.xlane.f32.xlu0 %v522_v5  ;;  %v1759_v5 = vrot.slane %v1284_v2, %v1715_v41 }
  0x27   : > { %1343 = vmatpush3.bf16.msra.mxu1 %v1342_v28 }
  0x2a   : > { %1320 = vmatmul.mubr.msk.f32.vlgmr.msra.gmra.mrb[0].mxu1 %vm828_vm1, %v822_v29 }
  0x2b   : > { %1081 = vmatprep.mubr.f32.mxu1 %v1500_v22 }
  0xae   : > { %v519_v7 = vpop.xlane.xlu0 %518 }
  0xaf   : > { %v525_v8 = vmul.f32 0.00390625, %v519_v7  ;;  %v1286_v7 = vld [vmem:[%s2053_s2 + $0xa] sm:$0x3] }
  0xb1   : > { %v527_v10 = vmul.f32 %v525_v8, %v525_v8 }
  0xb2   : > { %v524_v9 = vpop.xlane.xlu0 %523 }
  0xb3   : > { %v526_v11 = vmul.f32 0.00390625, %v524_v9 }
  0xb5   : > { %v528_v12 = vsub.f32 %v526_v11, %v527_v10  ;;  %v1771_v10 = vrot.slane %v1285_v3, %v1715_v41  ;;  %v1774_v11 = vrot.slane %v1285_v3, %v1720_v43 }
  0xb7   : > { %v529_v13 = vmax.f32 %v528_v12, 0.0 }
  0xb9   : > { %v530_v14 = vadd.f32 1e-05, %v529_v13  ;;  %v827_v13 = vld [vmem:[%s2025_s8] sm:$0xff] }
  0xbb   : > { %1413 = vrsqrt.f32 %v530_v14 }
  0xc5   : > { %v1414_v16 = vpop.eup %1413 }
  0xc6   : > { %v532_v17 = vmul.f32 %v1414_v16, %v515_v15  ;;  %v1783_v15 = vrot.slane %v1286_v7, %v1715_v41 }
  0xc8   : > { %537 = vperm.xlu1 %1411, %v532_v17   ;;  %v533_v19 = vmul.f32 %v532_v17, %v525_v8 }
  0xca   : > { %v534_v20 = vsub.f32 %v516_v18, %v533_v19  ;;  %v1791_v19 = vrot.slane %v1286_v7, %v1720_v43 }
  0xcc   : > { %544 = vperm.xlu1 %1411, %v534_v20  }
  0xfd   : > { %v898_v20 = vpop.f32.mrb[0].mxu1 }
  0xfe   : > { %v899_v25 = vadd.f32 %v898_v20, %v827_v13  ;;  %v1321_v26 = vpop.f32.mrb[1].mxu1  ;;  %v726_v13 = vld [vmem:[%s2022_s5] sm:$0xff] }
 0x147   : > { %v538_v30 = vpop.permute.xlu1 %537 }
 0x148   : > { %v540_v31 = vmul.f32 %v538_v30, %v1646_v0  ;;  %v541_v32 = vmul.f32 %v538_v30, %v1648_v1 }
 0x14b   : > { %v545_v33 = vpop.permute.xlu1 %544 }
 0x14c   : > { %v1674_v34 = vadd.f32 %v545_v33, %v540_v31  ;;  %v1676_v35 = vadd.f32 %v545_v33, %v541_v32 }
 0x14e   : > { %551 = vrot.lane.b32.xlu1 %v1676_v35, %s1501_s0  ;;  %549 = vrot.lane.b32.xlu0 %v1674_v34, %s1501_s0 }
 0x152   : > { %572 = vrot.lane.b32.xlu1 %v1674_v34, %s1502_s20  ;;  %618 = vrot.lane.b32.xlu0 %v1676_v35, %s1503_s27 }
 0x156   : > { %574 = vrot.lane.b32.xlu1 %v1676_v35, %s1502_s20  ;;  %640 = vrot.lane.b32.xlu0 %v1676_v35, %s2036_s16 }
 0x15a   : > { %594 = vrot.lane.b32.xlu1 %v1674_v34, %s2034_s17  ;;  %662 = vrot.lane.b32.xlu0 %v1676_v35, %s2038_s23 }
 0x15e   : > { %596 = vrot.lane.b32.xlu1 %v1676_v35, %s2034_s17  ;;  %684 = vrot.lane.b32.xlu0 %v1676_v35, %s2040_s25  ;;  %s2057_s17 = smov 112  }
 0x162   : > { %616 = vrot.lane.b32.xlu1 %v1674_v34, %s1503_s27  ;;  %706 = vrot.lane.b32.xlu0 %v1676_v35, %s2042_s30 }
 0x166   : > { %638 = vrot.lane.b32.xlu1 %v1674_v34, %s2036_s16  ;;  %906 = vperm.xlu0 %1412, %v899_v25   ;;  %s2056_s16 = smov 113  }
 0x16a   : > { %660 = vrot.lane.b32.xlu1 %v1674_v34, %s2038_s23 }
 0x16e   : > { %682 = vrot.lane.b32.xlu1 %v1674_v34, %s2040_s25 }
 0x172   : > { %704 = vrot.lane.b32.xlu1 %v1674_v34, %s2042_s30  ;;  %s2054_s30 = smov 15  }
 0x176   : > { %730 = vperm.xlu1 %1411, %v727_v36  }
 0x1c0   : > { %v552_v39 = vpop.permute.xlu1 %551  ;;  %v550_v45 = vpop.permute.xlu0 %549 }
 0x1c1   : > { %v556_v51 = vsel %vm555_vm2, %v550_v45, %v552_v39  ;;  %v557_v52 = vsel %vm555_vm2, %v552_v39, %v550_v45  ;;  %v1812_v45 = vrot.slane %v1287_v37, %v1715_v41 }
 0x1c2   : > { %v570_v56 = vmul.f32 %v1727_v47, %v557_v52  ;;  %v571_v58 = vmul.f32 %v1734_v49, %v556_v51  ;;  %v1815_v51 = vrot.slane %v1287_v37, %v1720_v43  ;;  %v1819_v52 = vrot.slane %v1288_v38, %v1715_v41  ;;  %v1102_v37 = vld [vmem:[%s2030_s13] sm:$0xff] }
 0x1c4   : > { %v573_v46 = vpop.permute.xlu1 %572  ;;  %v619_v60 = vpop.permute.xlu0 %618 }
 0x1c8   : > { %v575_v53 = vpop.permute.xlu1 %574  ;;  %v641_v8 = vpop.permute.xlu0 %640 }
 0x1c9   : > { %v577_v54 = vsel %vm576_vm3, %v573_v46, %v575_v53  ;;  %v578_v55 = vsel %vm576_vm3, %v575_v53, %v573_v46  ;;  %v1822_v53 = vrot.slane %v1288_v38, %v1720_v43 }
 0x1ca   : > { %v592_v57 = vmul.f32 %v1731_v48, %v578_v55  ;;  %v593_v59 = vmul.f32 %v1737_v50, %v577_v54 }
 0x1cc   : > { %v595_v61 = vpop.permute.xlu1 %594  ;;  %v1322_v62 = vpack.c.bf16 %v593_v59, %v571_v58  ;;  %v1324_v63 = vpack.c.bf16 %v592_v57, %v570_v56  ;;  %v663_v27 = vpop.permute.xlu0 %662 }
 0x1ce   : > { %1323 = vmatprep.subr.bf16.mxu0 %v1322_v62 }
 0x1cf   : > { %1325 = vmatpush1.bf16.msra.mxu0 %v1324_v63 }
 0x1d0   : > { %v597_v4 = vpop.permute.xlu1 %596  ;;  %v685_v46 = vpop.permute.xlu0 %684 }
 0x1d1   : > { %v600_v9 = vsel %vm598_vm4, %v597_v4, %v595_v61  ;;  %v599_v12 = vsel %vm598_vm4, %v595_v61, %v597_v4 }
 0x1d2   : > { %v614_v16 = vmul.f32 %v1759_v5, %v600_v9  ;;  %v615_v21 = vmul.f32 %v1762_v6, %v599_v12 }
 0x1d4   : > { %v617_v14 = vpop.permute.xlu1 %616  ;;  %v707_v63 = vpop.permute.xlu0 %706 }
 0x1d5   : > { %v621_v17 = vsel %vm620_vm5, %v617_v14, %v619_v60  ;;  %v622_v18 = vsel %vm620_vm5, %v619_v60, %v617_v14 }
 0x1d6   : > { %v636_v23 = vmul.f32 %v1771_v10, %v622_v18  ;;  %v637_v24 = vmul.f32 %v1774_v11, %v621_v17 }
 0x1d8   : > { %v639_v28 = vpop.permute.xlu1 %638  ;;  %v1326_v29 = vpack.c.bf16 %v637_v24, %v615_v21  ;;  %v1328_v30 = vpack.c.bf16 %v636_v23, %v614_v16 }
 0x1d9   : > { %v643_v31 = vsel %vm642_vm6, %v639_v28, %v641_v8  ;;  %v644_v32 = vsel %vm642_vm6, %v641_v8, %v639_v28 }
 0x1da   : > { %v658_v33 = vmul.f32 %v1783_v15, %v643_v31  ;;  %v659_v36 = vmul.f32 %v1791_v19, %v644_v32  ;;  %1327 = vmatprep.subr.bf16.mxu0 %v1326_v29 }
 0x1db   : > { %1329 = vmatpush1.bf16.msra.mxu0 %v1328_v30 }
 0x1dc   : > { %v661_v39 = vpop.permute.xlu1 %660  ;;  %v1330_v42 = vpack.c.bf16 %v659_v36, %v1676_v35  ;;  %v1332_v44 = vpack.c.bf16 %v658_v33, %v1674_v34  ;;  %v1289_v34 = vld [vmem:[%s2053_s2 + $0x10] sm:$0x3] }
 0x1dd   : > { %v665_v35 = vsel %vm664_vm7, %v661_v39, %v663_v27  ;;  %v666_v54 = vsel %vm664_vm7, %v663_v27, %v661_v39  ;;  %v1837_v58 = vrot.slane %v1289_v34, %v1720_v43  ;;  %v1844_v7 = vrot.slane %v1289_v34, %v1715_v41 }
 0x1de   : > { %1331 = vmatprep.subr.bf16.mxu0 %v1330_v42  ;;  %v680_v59 = vmul.f32 %v1812_v45, %v665_v35  ;;  %v681_v60 = vmul.f32 %v1815_v51, %v666_v54 }
 0x1df   : > { %1333 = vmatpush1.bf16.msra.mxu0 %v1332_v44 }
 0x1e0   : > { %v683_v55 = vpop.permute.xlu1 %682 }
 0x1e1   : > { %v687_v56 = vsel %vm686_vm8, %v683_v55, %v685_v46  ;;  %v688_v57 = vsel %vm686_vm8, %v685_v46, %v683_v55  ;;  %v902_v55 = vld [vmem:[%s2026_s9] sm:$0xff] }
 0x1e2   : > { %v702_v61 = vmul.f32 %v1819_v52, %v687_v56  ;;  %v703_v62 = vmul.f32 %v1822_v53, %v688_v57 }
 0x1e4   : > { %v705_v2 = vpop.permute.xlu1 %704  ;;  %v1334_v3 = vpack.c.bf16 %v703_v62, %v681_v60  ;;  %v1336_v4 = vpack.c.bf16 %v702_v61, %v680_v59  ;;  %v903_v59 = vld [vmem:[%s2027_s10] sm:$0xff] }
 0x1e5   : > { %v710_v8 = vsel %vm708_vm9, %v707_v63, %v705_v2  ;;  %v709_v43 = vsel %vm708_vm9, %v705_v2, %v707_v63  ;;  %v907_v27 = vpop.permute.xlu0 %906 }
 0x1e6   : > { %v725_v9 = vmul.f32 %v1837_v58, %v710_v8  ;;  %1335 = vmatprep.subr.bf16.mxu0 %v1334_v3  ;;  %v724_v12 = vmul.f32 %v1844_v7, %v709_v43  ;;  %v1008_v43 = vld [vmem:[%s2029_s12] sm:$0xff] }
 0x1e7   : > { %1337 = vmatpush1.bf16.msra.mxu0 %v1336_v4 }
 0x1e8   : > { %753 = vmatprep.subr.mxu0 %v725_v9 }
 0x1eb   : > { %754 = vmatpush1.msra.mxu0 %v724_v12 }
 0x1ec   : > { %1290 = vmatmul.mubr.msk.f32.vlgmr.msra.gmra.mrb[0].mxu0 %vm733_vm10, %v726_v13  ;;  %1113 = vmatprep.subr.mxu0 %v1648_v1  ;;  %v1103_v13 = vld [vmem:[%s2031_s14] sm:$0xff] }
 0x1ed   : > { %1114 = vmatpush1.msra.mxu0 %v1646_v0  ;;  %1177 = vmatprep.mubr.f32.mxu0 %v1500_v22 }
 0x1f0   : > { %1297 = vmatmul.mubr.msk.f32.vlgmr.msra.gmra.mrb[2].mxu0 %vm1109_vm11, %v1102_v37 }
 0x1f5   : > { %v731_v41 = vpop.permute.xlu1 %730 }
 0x2bf   : > { %v803_v14 = vpop.f32.mrb[0].mxu0 }
 0x2c0   : > { %v804_v16 = vadd.f32 %v803_v14, %v731_v41  ;;  %v805_v17 = vpop.f32.mrb[1].mxu0 }
 0x2c1   : > { %v806_v18 = vadd.f32 %v805_v17, %v731_v41 }
 0x2c2   : > { %v1291_v20 = vmul.f32 -1.442695, %v804_v16 }
 0x2c3   : > { %v1292_v21 = vmul.f32 -1.442695, %v806_v18  ;;  %v1903_v9 = vpop.f32.mrb[2].mxu0 }
 0x2c4   : > { %1415 = vpow2.f32 %v1291_v20  ;;  %v1907_v12 = vpop.f32.mrb[3].mxu0 }
 0x2c5   : > { %1417 = vpow2.f32 %v1292_v21 }
 0x2ce   : > { %v1416_v23 = vpop.eup %1415 }
 0x2cf   : > { %v1418_v24 = vpop.eup %1417  ;;  %v814_v25 = vadd.f32 1.0, %v1416_v23 }
 0x2d0   : > { %v815_v26 = vadd.f32 1.0, %v1418_v24 }
 0x2d1   : > { %1419 = vrcp.f32 %v814_v25 }
 0x2d2   : > { %1421 = vrcp.f32 %v815_v26 }
 0x2db   : > { %v1420_v1 = vpop.eup %1419 }
 0x2dc   : > { %v1422_v0 = vpop.eup %1421  ;;  %v820_v28 = vmul.f32 %v1420_v1, %v804_v16 }
 0x2dd   : > { %v821_v22 = vmul.f32 %v1422_v0, %v806_v18 }
 0x2de   : > { %v909_v29 = vadd.f32 %v907_v27, %v820_v28 }
 0x2df   : > { %v910_v30 = vadd.f32 %v907_v27, %v821_v22 }
 0x2e0   : > { %v914_v31 = vmul.f32 %v909_v29, %v909_v29 }
 0x2e1   : > { %v911_v32 = vadd.f32 %v910_v30, %v909_v29  ;;  %v915_v33 = vmul.f32 %v910_v30, %v910_v30 }
 0x2e3   : > { %912 = vadd.xlane.f32.xlu1 %v911_v32  ;;  %v916_v36 = vadd.f32 %v915_v33, %v914_v31 }
 0x2e5   : > { %917 = vadd.xlane.f32.xlu0 %v916_v36 }
 0x370   : > { %v913_v38 = vpop.xlane.xlu1 %912 }
 0x371   : > { %v919_v39 = vmul.f32 0.00390625, %v913_v38 }
 0x372   : > { %v918_v42 = vpop.xlane.xlu0 %917 }
 0x373   : > { %v921_v44 = vmul.f32 %v919_v39, %v919_v39  ;;  %v920_v46 = vmul.f32 0.00390625, %v918_v42 }
 0x375   : > { %v922_v34 = vsub.f32 %v920_v46, %v921_v44 }
 0x377   : > { %v923_v35 = vmax.f32 %v922_v34, 0.0 }
 0x379   : > { %v924_v54 = vadd.f32 1e-05, %v923_v35 }
 0x37b   : > { %1423 = vrsqrt.f32 %v924_v54 }
 0x385   : > { %v1424_v56 = vpop.eup %1423 }
 0x386   : > { %v926_v57 = vmul.f32 %v1424_v56, %v902_v55 }
 0x388   : > { %931 = vperm.xlu1 %1411, %v926_v57   ;;  %v927_v60 = vmul.f32 %v926_v57, %v919_v39 }
 0x38a   : > { %v928_v61 = vsub.f32 %v903_v59, %v927_v60 }
 0x38c   : > { %938 = vperm.xlu0 %1412, %v928_v61  }
 0x407   : > { %v932_v62 = vpop.permute.xlu1 %931 }
 0x408   : > { %v934_v63 = vmul.f32 %v932_v62, %v909_v29  ;;  %v935_v4 = vmul.f32 %v932_v62, %v910_v30 }
 0x40b   : > { %v939_v2 = vpop.permute.xlu0 %938 }
 0x40c   : > { %v1868_v3 = vadd.f32 %v939_v2, %v934_v63  ;;  %v1874_v8 = vadd.f32 %v939_v2, %v935_v4 }
 0x40e   : > { %951 = vrot.lane.b32.xlu0 %v1868_v3, %s1502_s20  ;;  %943 = vrot.lane.b32.xlu1 %v1868_v3, %s1501_s0 }
 0x412   : > { %959 = vrot.lane.b32.xlu0 %v1868_v3, %s2054_s30  ;;  %945 = vrot.lane.b32.xlu1 %v1874_v8, %s1501_s0  ;;  %s2058_s0 = smov 111  }
 0x416   : > { %967 = vrot.lane.b32.xlu0 %v1868_v3, %s1503_s27  ;;  %953 = vrot.lane.b32.xlu1 %v1874_v8, %s1502_s20 }
 0x41a   : > { %975 = vrot.lane.b32.xlu0 %v1868_v3, %s2055_s26  ;;  %961 = vrot.lane.b32.xlu1 %v1874_v8, %s2054_s30 }
 0x41e   : > { %983 = vrot.lane.b32.xlu0 %v1868_v3, %s2056_s16  ;;  %969 = vrot.lane.b32.xlu1 %v1874_v8, %s1503_s27 }
 0x422   : > { %991 = vrot.lane.b32.xlu0 %v1868_v3, %s2057_s17  ;;  %977 = vrot.lane.b32.xlu1 %v1874_v8, %s2055_s26 }
 0x426   : > { %999 = vrot.lane.b32.xlu0 %v1868_v3, %s2058_s0  ;;  %985 = vrot.lane.b32.xlu1 %v1874_v8, %s2056_s16  ;;  %s500_s16 = sand.u32 1, %s1487_s19  }
 0x42a   : > { %1011 = vperm.xlu0 %1412, %v1008_v43   ;;  %993 = vrot.lane.b32.xlu1 %v1874_v8, %s2057_s17  ;;  %s1278_s17 = sshll.u32 %s500_s16, 4 }
 0x42b   : > { %s502_s20 = scalar_lea.vmem [#allocation2], %s1278_s17  ;;  %s1509_s17 = smov [#allocation2]  }
 0x42c   : > { %s1203_s23 = sshll.u32 %s502_s20, 4  ;;  %s1437_s1 = sshll.u32 %s1509_s17, 4  ;;  %s1977_s23 = int_to_ptr.vmem [resolvable:$true] %s1203_s23  ;;  %s1438_s1 = int_to_ptr.vmem [resolvable:$false] %s1437_s1 }
 0x42d   : > { %s1433_s26 = scalar_lea.vmem %s1977_s23, 256  ;;  %s1439_s2 = scalar_lea.vmem %s1438_s1, 512 }
 0x42e   : > { %1001 = vrot.lane.b32.xlu1 %v1874_v8, %s2058_s0  ;;  %s1305_s0 = sshll.u32 %s1611_s22, 8  ;;  %s1189_s22 = scalar_lea.sflag [#allocation3], %s500_s16 }
 0x42f   : > { %s1975_s30 = scalar_lea.hbm %s2032_s15, %s1305_s0  ;;  %p1434_p11 = scmp.ne.s32.totalorder %s1977_s23, %s1433_s26 }
 0x430   : > { %p1440_p0 = scmp.lt.s32.totalorder %s1977_s23, %s1438_s1  ;;  %p1441_p1 = scmp.lt.s32.totalorder %s1439_s2, %s1433_s26 }
 0x431   : > { %p1435_p12 = pnand %p1434_p11, %p1628_p5 }
 0x432   : > { %1106 = vperm.xlu1 %1411, %v1103_v13   ;;  %p1442_p2 = por %p1441_p1, %p1440_p0 }
 0x433   : > { %p1436_p13 = pneg %p1435_p12 }
 0x435   : > { %p1443_p3 = pnand %p1442_p2, %p1436_p13 }
 0x480   : > { %v952_v41 = vpop.permute.xlu0 %951  ;;  %v944_v14 = vpop.permute.xlu1 %943 }
 0x484   : > { %v960_v16 = vpop.permute.xlu0 %959  ;;  %v946_v17 = vpop.permute.xlu1 %945 }
 0x485   : > { %v947_v18 = vsel %vm555_vm2, %v944_v14, %v946_v17  ;;  %v948_v20 = vsel %vm555_vm2, %v946_v17, %v944_v14 }
 0x486   : > { %v949_v26 = vmul.f32 %v948_v20, %v1727_v47  ;;  %v950_v1 = vmul.f32 %v947_v18, %v1734_v49 }
 0x488   : > { %v968_v21 = vpop.permute.xlu0 %967  ;;  %v954_v23 = vpop.permute.xlu1 %953 }
 0x489   : > { %v955_v24 = vsel %vm576_vm3, %v952_v41, %v954_v23  ;;  %v956_v25 = vsel %vm576_vm3, %v954_v23, %v952_v41 }
 0x48a   : > { %v957_v27 = vmul.f32 %v956_v25, %v1731_v48  ;;  %v958_v0 = vmul.f32 %v955_v24, %v1737_v50 }
 0x48c   : > { %v1346_v28 = vpack.c.bf16 %v957_v27, %v949_v26  ;;  %v962_v22 = vpop.permute.xlu1 %961  ;;  %v1344_v29 = vpack.c.bf16 %v958_v0, %v950_v1  ;;  %v976_v30 = vpop.permute.xlu0 %975 }
 0x48d   : > { %v963_v31 = vsel %vm598_vm4, %v960_v16, %v962_v22  ;;  %v964_v32 = vsel %vm598_vm4, %v962_v22, %v960_v16 }
 0x48e   : > { %1345 = vmatprep.subr.bf16.mxu1 %v1344_v29  ;;  %v965_v49 = vmul.f32 %v964_v32, %v1759_v5  ;;  %v966_v50 = vmul.f32 %v963_v31, %v1762_v6 }
 0x48f   : > { %1347 = vmatpush1.bf16.msra.mxu1 %v1346_v28 }
 0x490   : > { %v970_v33 = vpop.permute.xlu1 %969  ;;  %v984_v38 = vpop.permute.xlu0 %983 }
 0x491   : > { %v971_v47 = vsel %vm620_vm5, %v968_v21, %v970_v33  ;;  %v972_v48 = vsel %vm620_vm5, %v970_v33, %v968_v21 }
 0x492   : > { %v973_v36 = vmul.f32 %v972_v48, %v1771_v10  ;;  %v974_v37 = vmul.f32 %v971_v47, %v1774_v11 }
 0x494   : > { %v1350_v39 = vpack.c.bf16 %v973_v36, %v965_v49  ;;  %v978_v42 = vpop.permute.xlu1 %977  ;;  %v1348_v44 = vpack.c.bf16 %v974_v37, %v966_v50  ;;  %v992_v54 = vpop.permute.xlu0 %991 }
 0x495   : > { %v979_v46 = vsel %vm642_vm6, %v976_v30, %v978_v42  ;;  %v980_v34 = vsel %vm642_vm6, %v978_v42, %v976_v30 }
 0x496   : > { %v981_v35 = vmul.f32 %v979_v46, %v1783_v15  ;;  %v982_v5 = vmul.f32 %v980_v34, %v1791_v19  ;;  %1349 = vmatprep.subr.bf16.mxu1 %v1348_v44 }
 0x497   : > { %1351 = vmatpush1.bf16.msra.mxu1 %v1350_v39 }
 0x498   : > { %v1354_v6 = vpack.c.bf16 %v981_v35, %v1868_v3  ;;  %v986_v10 = vpop.permute.xlu1 %985  ;;  %v1352_v11 = vpack.c.bf16 %v982_v5, %v1874_v8  ;;  %v1000_v63 = vpop.permute.xlu0 %999 }
 0x499   : > { %v987_v55 = vsel %vm664_vm7, %v984_v38, %v986_v10  ;;  %v988_v56 = vsel %vm664_vm7, %v986_v10, %v984_v38 }
 0x49a   : > { %1353 = vmatprep.subr.bf16.mxu1 %v1352_v11  ;;  %v989_v59 = vmul.f32 %v987_v55, %v1812_v45  ;;  %v990_v60 = vmul.f32 %v988_v56, %v1815_v51  ;;  %v1007_v51 = vld [vmem:[%s2028_s11] sm:$0xff] }
 0x49b   : > { %1355 = vmatpush1.bf16.msra.mxu1 %v1354_v6 }
 0x49c   : > { %v994_v57 = vpop.permute.xlu1 %993 }
 0x49d   : > { %v995_v15 = vsel %vm686_vm8, %v992_v54, %v994_v57  ;;  %v996_v19 = vsel %vm686_vm8, %v994_v57, %v992_v54 }
 0x49e   : > { %v997_v61 = vmul.f32 %v995_v15, %v1819_v52  ;;  %v998_v62 = vmul.f32 %v996_v19, %v1822_v53 }
 0x4a0   : > { %v1358_v2 = vpack.c.bf16 %v997_v61, %v989_v59  ;;  %v1002_v3 = vpop.permute.xlu1 %1001  ;;  %v1356_v4 = vpack.c.bf16 %v998_v62, %v990_v60 }
 0x4a1   : > { %v1004_v8 = vsel %vm708_vm9, %v1002_v3, %v1000_v63  ;;  %v1003_v43 = vsel %vm708_vm9, %v1000_v63, %v1002_v3 }
 0x4a2   : > { %v1006_v13 = vmul.f32 %v1004_v8, %v1837_v58  ;;  %1357 = vmatprep.subr.bf16.mxu1 %v1356_v4  ;;  %v1005_v45 = vmul.f32 %v1003_v43, %v1844_v7 }
 0x4a3   : > { %1359 = vmatpush1.bf16.msra.mxu1 %v1358_v2 }
 0x4a4   : > { %1033 = vmatprep.subr.mxu1 %v1006_v13 }
 0x4a7   : > { %1034 = vmatpush1.msra.mxu1 %v1005_v45 }
 0x4a8   : > { %1294 = vmatmul.mubr.msk.f32.vlgmr.msra.gmra.mrb[2].mxu1 %vm733_vm10, %v1007_v51 }
 0x4a9   : > { %v1012_v52 = vpop.permute.xlu0 %1011 }
 0x4b1   : > { %v1107_v21 = vpop.permute.xlu1 %1106 }
 0x4b2   : > { %v1180_v25 = vadd.f32 %v1903_v9, %v1107_v21  ;;  %v1182_v1 = vadd.f32 %v1907_v12, %v1107_v21 }
 0x57b   : > { %v1083_v53 = vpop.f32.mrb[2].mxu1 }
 0x57c   : > { %v1084_v41 = vadd.f32 %v1083_v53, %v1012_v52  ;;  %v1085_v40 = vpop.f32.mrb[3].mxu1 }
 0x57d   : > { %v1086_v14 = vadd.f32 %v1085_v40, %v1012_v52 }
 0x57e   : > { %v1295_v16 = vmul.f32 -1.442695, %v1084_v41 }
 0x57f   : > { %v1296_v58 = vmul.f32 -1.442695, %v1086_v14 }
 0x580   : > { %1425 = vpow2.f32 %v1295_v16 }
 0x581   : > { %1427 = vpow2.f32 %v1296_v58 }
 0x58a   : > { %v1426_v17 = vpop.eup %1425 }
 0x58b   : > { %v1428_v7 = vpop.eup %1427  ;;  %v1094_v18 = vadd.f32 1.0, %v1426_v17 }
 0x58c   : > { %v1095_v20 = vadd.f32 1.0, %v1428_v7 }
 0x58d   : > { %1429 = vrcp.f32 %v1094_v18 }
 0x58e   : > { %1431 = vrcp.f32 %v1095_v20 }
 0x597   : > { %v1430_v23 = vpop.eup %1429 }
 0x598   : > { %v1432_v24 = vpop.eup %1431  ;;  %v1100_v26 = vmul.f32 %v1430_v23, %v1084_v41 }
 0x599   : > { %v1101_v27 = vmul.f32 %v1432_v24, %v1086_v14 }
 0x59a   : > { %v1184_v0 = vadd.f32 %v1180_v25, %v1100_v26 }
 0x59b   : > { %v1185_v28 = vadd.f32 %v1182_v1, %v1101_v27 }
 0x59c   : > { %1186 = vst [vmem:[%s502_s20] sm:$0xff] %v1184_v0 }
 0x59d   : > { %1187 = vst [vmem:[%s502_s20 + $0x8] sm:$0xff] %v1185_v28 }
 0x59e   : > { %1446 = shalt.err (!%p1443_p3)
}
 0x59f   : > { %s1447_s16 = scalar_lea.hbm %s1975_s30, 256  ;;  %s1451_s27 = scalar_lea.hbm %s2032_s15, 512 }
 0x5a0   : > { %p1448_p4 = scmp.ne.s32.totalorder %s1975_s30, %s1447_s16  ;;  %p1452_p9 = scmp.lt.u32.totalorder %s1975_s30, %s2032_s15 }
 0x5a1   : > { %p1453_p10 = scmp.lt.u32.totalorder %s1451_s27, %s1447_s16  ;;  %p1455_p12 = scmp.lt.u32.totalorder %s1447_s16, %s1975_s30 }
 0x5a2   : > { %p1449_p7 = pnand %p1448_p4, %p1628_p5 }
 0x5a3   : > { %p1454_p11 = por %p1453_p10, %p1452_p9 }
 0x5a4   : > { %p1450_p8 = pneg %p1449_p7 }
 0x5a5   : > { %p1456_p13 = por %p1455_p12, %p1454_p11 }
 0x5a7   : > { %p1457_p0 = pnand %p1456_p13, %p1450_p8 }
 0x5a9   : > { %1460 = shalt.err (!%p1457_p0)
}
 0x5aa   : > { %1360 = dma.vmem_to_hbm [thread:$0]  (%p1628_p5), %s1977_s23, 256, %s1975_s30, %s1189_s22  }
 0x5ab PF: > { %p1366_p1 = scmp.ge.s32.totalorder %s1495_s21, 2  ;;  %s1215_s2 = sand.u32 1, %s1483_s18  }
 0x5ac   : > { %s1216_s26 = scalar_lea.sflag [#allocation3], %s1215_s2 }
 0x5ad   : > { %p1363_p2 = pnand %p1366_p1, %p1632_p6 }
 0x5af   : > { %1478 = dma.done.wait (!%p1363_p2), %s1216_s26, 256  }
 0x5b0   : > { %1480 = vsyncadd (!%p1363_p2), %s1216_s26, 4294967040  ;;  %s2059_s17 = sld [smem:[#allocation5_spill]]  ;;  %s2060_s20 = sld [smem:[#allocation6_spill]] }
 0x5b1   : > { %p25_p3 = scmp.ge.s32.totalorder %s1615_s24, 4   ;;  %s2061_s18 = smov %s1487_s19 }
 0x5b2   : > { %s2063_s21 = smov %s1615_s24 }
 0x5b3   :  { %27 = sbr.rel (!%p25_p3) target bundleno = 7 (0x7), region = 125 }
 0x5b6   : > { %s2062_s19 = smov %s2059_s17 }
 0x5ba   :  { %1221 = vsyncpa [#allocation3], 1 }
 0x5bb   :  { %1223 = vsyncpa [#allocation3 + $0x1], 1 }

</bundles_post_ra>
